<compile_context>
chip_gen: v6e
topology: v6e:2x2x1
jax: 0.10.0
libtpu: 0.0.40
codegen_flags: <defaults>
</compile_context>

<pallas_src>
import functools

import jax
import jax.numpy as jnp
from jax.experimental import pallas as pl
from jax.experimental.pallas import tpu as pltpu


def _round_up(x, m):
    return ((x + m - 1) // m) * m


def _cosine_score_kernel(q_ref, c_ref, o_ref):
    # q_ref: (Bp, Dp)      pre-normalized queries, bf16, resident across grid
    # c_ref: (tile_n, Dp)  pre-normalized candidate tile, bf16, streamed
    # o_ref: (Bp, tile_n)  scores, f32
    # Last-dim contraction feeds the MXU directly (no transpose of the tile).
    o_ref[...] = jax.lax.dot_general(
        q_ref[...],
        c_ref[...],
        dimension_numbers=(((1,), (1,)), ((), ())),
        preferred_element_type=jnp.float32,
    )


@functools.partial(jax.jit, static_argnames=("tile_n", "n_valid"))
def _cosine_scores_jit(query_emb, cand_norm, *, tile_n, n_valid):
    """query_emb: (B, D) un-normalized float.
    cand_norm:   (Np, Dp) bf16, rows already L2-normalized (padding rows = 0),
                 Np % tile_n == 0, Dp % 128 == 0, Dp >= D.
    Returns (B, n_valid) f32 cosine scores."""
    B, D = query_emb.shape
    Np, Dp = cand_norm.shape
    assert Np % tile_n == 0 and Dp % 128 == 0 and Dp >= D

    # Normalize the query ONCE per forward (tiny VPU/EUP op), not per tile.
    q = query_emb.astype(jnp.float32)
    q = q * jax.lax.rsqrt(jnp.sum(q * q, axis=-1, keepdims=True) + 1e-12)

    # Pad batch to a sublane multiple of 8 (unmasked output stores) and pad D
    # up to the candidates' lane-padded Dp (zero cols don't change dots).
    Bp = max(8, _round_up(B, 8))
    if Bp != B or Dp != D:
        q = jnp.pad(q, ((0, Bp - B), (0, Dp - D)))
    q = q.astype(cand_norm.dtype)

    grid = (Np // tile_n,)

    cost = pl.CostEstimate(
        flops=2 * Bp * Np * Dp,
        transcendentals=0,
        bytes_accessed=(
            Np * Dp * cand_norm.dtype.itemsize
            + Bp * Dp * q.dtype.itemsize
            + Bp * Np * 4
        ),
    )

    # Double-buffered candidate tile + resident query block + double-buffered
    # output slab + headroom; capped at 64 MiB so it also fits v7x VMEM.
    vmem_needed = (
        2 * tile_n * Dp * cand_norm.dtype.itemsize
        + Bp * Dp * q.dtype.itemsize
        + 2 * Bp * tile_n * 4
        + (4 << 20)
    )
    vmem_limit = int(min(64 << 20, max(16 << 20, vmem_needed)))

    scores = pl.pallas_call(
        _cosine_score_kernel,
        out_shape=jax.ShapeDtypeStruct((Bp, Np), jnp.float32),
        grid_spec=pltpu.PrefetchScalarGridSpec(
            num_scalar_prefetch=0,
            grid=grid,
            in_specs=[
                # full (padded) query block, resident across the candidate loop
                pl.BlockSpec((Bp, Dp), lambda j: (0, 0)),
                # one candidate tile per grid step
                pl.BlockSpec((tile_n, Dp), lambda j: (j, 0)),
            ],
            out_specs=pl.BlockSpec((Bp, tile_n), lambda j: (0, j)),
        ),
        compiler_params=pltpu.CompilerParams(
            dimension_semantics=("parallel",),
            vmem_limit_bytes=vmem_limit,
        ),
        cost_estimate=cost,
    )(q, cand_norm)
    return scores[:B, :n_valid]


def prepare_candidates(cand_embs, *, tile_n=1024):
    """L2-normalize KB candidate embeddings once, cast bf16, and zero-pad rows
    to a multiple of the candidate tile and columns to a multiple of 128."""
    N, D = cand_embs.shape
    e = cand_embs.astype(jnp.float32)
    e = e * jax.lax.rsqrt(jnp.sum(e * e, axis=-1, keepdims=True) + 1e-12)
    tile = min(tile_n, _round_up(N, 128))
    Np = _round_up(N, tile)
    Dp = _round_up(D, 128)
    if Np != N or Dp != D:
        e = jnp.pad(e, ((0, Np - N), (0, Dp - D)))
    return e.astype(jnp.bfloat16), N, tile


def cosine_scores(query_emb, cand_norm_bf16, *, tile_n=1024, n_valid=None):
    """Cosine similarity of every query against every (pre-normalized) candidate.

    query_emb:      (B, D) float (un-normalized)
    cand_norm_bf16: (N, Dp) bfloat16, rows already L2-normalized (padding rows
                    of zeros are allowed and score 0)
    returns:        (B, n_valid) float32
    """
    N, Dp = cand_norm_bf16.shape
    tile = min(tile_n, _round_up(N, 128))
    Np = _round_up(N, tile)
    Dpp = _round_up(Dp, 128)
    if Np != N or Dpp != Dp:
        cand_norm_bf16 = jnp.pad(cand_norm_bf16, ((0, Np - N), (0, Dpp - Dp)))
    if n_valid is None:
        n_valid = N
    return _cosine_scores_jit(
        query_emb, cand_norm_bf16, tile_n=tile, n_valid=n_valid
    )


class KB:
    """Tiny synthetic knowledge base standing in for `kb` in __init__."""

    def __init__(self, num_candidates, emb_dim, key):
        self.num_candidates = num_candidates
        self.candidate_ids = list(range(num_candidates))
        # deterministic candidate embeddings
        self.candidate_embs = jax.random.normal(
            key, (num_candidates, emb_dim), dtype=jnp.float32
        )


class ModelForSemiStructQA:
    """JAX/Pallas mirror of the PyTorch module's scoring path."""

    def __init__(self, kb, tile_n=1024):
        self.kb = kb
        self.candidate_ids = kb.candidate_ids
        self.num_candidates = kb.num_candidates
        self.query_emb_dict = {}
        # KB is static: normalize + cast bf16 + pad candidates ONCE so the
        # kernel never re-normalizes or handles remainder tiles per forward.
        self._cand_norm_bf16, self._n_valid, self._tile_n = prepare_candidates(
            kb.candidate_embs, tile_n=tile_n
        )

    def _get_query_emb(self, query_emb, query_id=None):
        # Synthetic stand-in for the OpenAI-embedding / disk-cache logic:
        # embeddings are passed in directly (deterministic, built in-script).
        if query_id is not None and query_id in self.query_emb_dict:
            return self.query_emb_dict[query_id]
        if query_id is not None:
            self.query_emb_dict[query_id] = query_emb
        return query_emb

    def forward(self, query_emb, candidates=None, query_id=None):
        """query_emb: (B, D).  Returns (scores, list of pred_dicts)."""
        q = self._get_query_emb(query_emb, query_id)
        scores = cosine_scores(
            q,
            self._cand_norm_bf16,
            tile_n=self._tile_n,
            n_valid=self._n_valid,
        )  # (B, N) via Pallas
        scores_host = jax.device_get(scores)
        # Vectorized dict construction (one zip per query, no per-element
        # float() casts); callers that only need the array can use `scores`.
        pred_dicts = [
            dict(zip(self.candidate_ids, scores_host[b].tolist()))
            for b in range(scores_host.shape[0])
        ]
        return scores, pred_dicts

    def evaluate_scatter(self, pred_dict, answer_ids):
        """Plain-JAX glue mirroring the scatter/gather in evaluate()."""
        pred_ids = jnp.asarray(list(pred_dict.keys()), dtype=jnp.int32)
        pred = jnp.asarray(list(pred_dict.values()), dtype=jnp.float32)
        max_id = max(self.candidate_ids)
        all_pred = jnp.full((max_id + 1,), jnp.min(pred) - 1.0, dtype=jnp.float32)
        all_pred = all_pred.at[pred_ids].set(pred)
        all_pred = all_pred[jnp.asarray(self.candidate_ids)]
        bool_gd = jnp.zeros((max_id + 1,), dtype=bool)
        bool_gd = bool_gd.at[jnp.asarray(answer_ids)].set(True)
        bool_gd = bool_gd[jnp.asarray(self.candidate_ids)]
        # TODO(synk): full ranking metrics (hit@k/recall@k/ndcg@k) omitted —
        # return a simple MRR computed in plain JAX instead.
        order = jnp.argsort(-all_pred)
        ranks = jnp.nonzero(bool_gd[order], size=1, fill_value=0)[0] + 1
        return {"mrr": float(1.0 / ranks[0])}


if __name__ == "__main__":
    key = jax.random.PRNGKey(0)
    k_cand, k_query = jax.random.split(key)

    B = 2          # number of queries
    D = 128        # embedding dim (small stand-in for ada-002's 1536)
    N = 512        # number of KB candidates

    kb = KB(num_candidates=N, emb_dim=D, key=k_cand)
    model = ModelForSemiStructQA(kb)

    query_emb = jax.random.normal(k_query, (B, D), dtype=jnp.float32)

    scores, pred_dicts = model.forward(query_emb, query_id=0)
    scores = jax.block_until_ready(scores)

    # Also exercise the multi-tile grid path explicitly (tile_n < N).
    scores_tiled = jax.block_until_ready(
        cosine_scores(query_emb, model._cand_norm_bf16, tile_n=256, n_valid=N)
    )

    # reference check in plain JAX (f32); bf16 candidates => looser tolerance
    qn = query_emb / jnp.linalg.norm(query_emb, axis=-1, keepdims=True)
    cn = kb.candidate_embs / jnp.linalg.norm(
        kb.candidate_embs, axis=-1, keepdims=True
    )
    ref = qn @ cn.T
    assert scores.shape == (B, N)
    assert scores_tiled.shape == (B, N)
    assert jnp.max(jnp.abs(scores - ref)) < 2e-2, "mismatch vs reference"
    assert jnp.max(jnp.abs(scores_tiled - ref)) < 2e-2, "tiled mismatch"

    # exercise the evaluate glue path
    _ = model.evaluate_scatter(pred_dicts[0], answer_ids=[3, 17])

    print("KERNEL_OK")
</pallas_src>

<mosaic_0001>
module attributes {stable_mosaic.version = 11 : i64} {
  func.func @_cosine_score_kernel(%arg0: i32, %arg1: memref<8x128xbf16, #tpu.memory_space<vmem>>, %arg2: memref<512x128xbf16, #tpu.memory_space<vmem>>, %arg3: memref<8x512xf32, #tpu.memory_space<vmem>>) attributes {dimension_semantics = [#tpu.dimension_semantics<parallel>], iteration_bounds = array<i64: 1>, scalar_prefetch = 0 : i64, scratch_operands = 0 : i64, tpu.core_type = #tpu.core_type<tc>, window_params = [{pipeline_mode = #tpu.pipeline_mode<synchronous>, transform_indices = @transform_0, window_bounds = array<i64: 8, 128>}, {transform_indices = @transform_1, window_bounds = array<i64: 512, 128>}, {transform_indices = @transform_2, window_bounds = array<i64: 8, 512>}]} {
    %c0 = arith.constant 0 : index
    %c0_0 = arith.constant 0 : index
    %0 = vector.load %arg1[%c0, %c0_0] : memref<8x128xbf16, #tpu.memory_space<vmem>>, vector<8x128xbf16>
    %c0_1 = arith.constant 0 : index
    %c0_2 = arith.constant 0 : index
    %1 = vector.load %arg2[%c0_1, %c0_2] : memref<512x128xbf16, #tpu.memory_space<vmem>>, vector<512x128xbf16>
    %cst = arith.constant dense<0.000000e+00> : vector<8x512xf32>
    %2 = tpu.matmul %0, %1, %cst {dimension_numbers = #tpu.dot_dimension_numbers<[1], [1], [0], [0], [0, 0, 1, 0], [], []>} : vector<8x128xbf16>, vector<512x128xbf16>, vector<8x512xf32> -> vector<8x512xf32>
    %c0_3 = arith.constant 0 : index
    %c0_4 = arith.constant 0 : index
    %3 = vector.load %arg3[%c0_3, %c0_4] : memref<8x512xf32, #tpu.memory_space<vmem>>, vector<8x512xf32>
    tpu.vector_store %arg3[%c0_3, %c0_4], %2 {strides = array<i32>} : memref<8x512xf32, #tpu.memory_space<vmem>>, vector<8x512xf32>,
    return
  }
  func.func @transform_0(%arg0: i32) -> (i32, i32) {
    %c0_i32 = arith.constant 0 : i32
    %c0_i32_0 = arith.constant 0 : i32
    %c0_i32_1 = arith.constant 0 : i32
    return %c0_i32, %c0_i32_0 : i32, i32
  }
  func.func @transform_1(%arg0: i32) -> (i32, i32) {
    %c0_i32 = arith.constant 0 : i32
    %c0_i32_0 = arith.constant 0 : i32
    return %arg0, %c0_i32 : i32, i32
  }
  func.func @transform_2(%arg0: i32) -> (i32, i32) {
    %c0_i32 = arith.constant 0 : i32
    %c0_i32_0 = arith.constant 0 : i32
    return %c0_i32, %arg0 : i32, i32
  }
}

</mosaic_0001>

<bundles_post_ra>
// kernel: _cosine_scores_jit.1
= control target key start
LH: loop header
LB: loop body
LE: loop exit
PB: predicated region body
PF: predicated region fallthrough
CT: control target
= control target key end

     0   :  { %7 = vsyncpa [#allocation3], 0  ;;  %s499_s9 = smov [#allocation2]   ;;  %s535_s0 = inlined_call_operand.vmem [shape: bf16[8,128], index: 0, kind: input, shape index: {}]   ;;  %s536_s1 = inlined_call_operand.hbm [shape: bf16[512,128], index: 1, kind: input, shape index: {}]   ;;  %s537_s2 = inlined_call_operand.vmem [shape: f32[8,512], index: 2, kind: output, shape index: {}]  }
   0x1   :  { %s15_s10 = sshll.u32 %s499_s9, 4  ;;  %s16_s10 = int_to_ptr.vmem [resolvable:$true] %s15_s10 }
   0x2   :  { %s485_s11 = scalar_lea.vmem %s16_s10, 4096  ;;  %p490_p1 = scmp.lt.s32.totalorder %s16_s10, %s16_s10 }
   0x3   :  { %p486_p0 = scmp.ne.s32.totalorder %s16_s10, %s485_s11  ;;  %p491_p2 = scmp.lt.s32.totalorder %s485_s11, %s485_s11 }
   0x5   :  { %p492_p3 = por %p491_p2, %p490_p1 }
   0x7   :  { %p493_p4 = pnand %p492_p3, %p486_p0 }
   0x9   :  { %496 = shalt.err (!%p493_p4)
}
   0xa   :  { %s500_s12 = smov 64   ;;  %s501_s13 = smov 4  }
   0xb   :  { %21 = dma.hbm_to_vmem [thread:$0]  %s536_s1, 4096, %s16_s10, [#allocation3], %s500_s12, %s500_s12, %s501_s13  }
   0xc   :  { %497 = dma.done.wait [#allocation3], 4096  }
   0xd   :  { %498 = vsyncadd [#allocation3], 4294963200  ;;  %v445_v0 = vld [vmem:[#allocation2 + $0x78] sm:$0xff]   ;;  %v449_v4 = vld [vmem:[#allocation2 + $0x70] sm:$0xff]  }
   0xe   :  { %v446_v1 = vld [vmem:[#allocation2 + $0xf8] sm:$0xff]   ;;  %406 = vmatprep.subr.bf16.mxu0 %v445_v0  ;;  %v450_v5 = vld [vmem:[#allocation2 + $0xf0] sm:$0xff]   ;;  %v453_v8 = vld [vmem:[#allocation2 + $0x68] sm:$0xff]  }
   0xf   :  { %v447_v2 = vld [vmem:[#allocation2 + $0x38] sm:$0xff]   ;;  %424 = vmatprep.subr.bf16.mxu1 %v446_v1  ;;  %v451_v6 = vld [vmem:[#allocation2 + $0x30] sm:$0xff]   ;;  %v454_v9 = vld [vmem:[#allocation2 + $0xe8] sm:$0xff]  }
  0x10   :  { %v448_v3 = vld [vmem:[#allocation2 + $0xb8] sm:$0xff]   ;;  %407 = vmatpush3.bf16.xpose.msra.mxu0 %v447_v2  ;;  %v452_v7 = vld [vmem:[#allocation2 + $0xb0] sm:$0xff]   ;;  %v455_v10 = vld [vmem:[#allocation2 + $0x28] sm:$0xff]  }
  0x11   :  { %425 = vmatpush3.bf16.xpose.msra.mxu1 %v448_v3  ;;  %408 = vmatprep.subr.bf16.mxu0 %v449_v4  ;;  %v456_v11 = vld [vmem:[#allocation2 + $0xa8] sm:$0xff]   ;;  %v457_v12 = vld [vmem:[#allocation2 + $0x60] sm:$0xff]   ;;  %v461_v16 = vld [vmem:[#allocation2 + $0x58] sm:$0xff]  }
  0x12   :  { %426 = vmatprep.subr.bf16.mxu1 %v450_v5  ;;  %v458_v13 = vld [vmem:[#allocation2 + $0xe0] sm:$0xff]   ;;  %v462_v17 = vld [vmem:[#allocation2 + $0xd8] sm:$0xff]   ;;  %v465_v21 = vld [vmem:[#allocation2 + $0x50] sm:$0xff]  }
  0x13   :  { %v459_v14 = vld [vmem:[#allocation2 + $0x20] sm:$0xff]   ;;  %v463_v18 = vld [vmem:[#allocation2 + $0x18] sm:$0xff]   ;;  %v466_v22 = vld [vmem:[#allocation2 + $0xd0] sm:$0xff]  }
  0x14   :  { %v460_v15 = vld [vmem:[#allocation2 + $0xa0] sm:$0xff]   ;;  %v464_v20 = vld [vmem:[#allocation2 + $0x98] sm:$0xff]   ;;  %v467_v23 = vld [vmem:[#allocation2 + $0x10] sm:$0xff]  }
  0x15   :  { %v26_v19 = vld [vmem:[%s535_s0] sm:$0xf]  ;;  %v468_v24 = vld [vmem:[#allocation2 + $0x90] sm:$0xff]   ;;  %v469_v25 = vld [vmem:[#allocation2 + $0x48] sm:$0xff]  }
  0x16   :  { %422 = vmatprep.mubr.bf16.mxu0 %v26_v19  ;;  %440 = vmatprep.mubr.bf16.mxu1 %v26_v19  ;;  %v470_v26 = vld [vmem:[#allocation2 + $0xc8] sm:$0xff]   ;;  %v473_v29 = vld [vmem:[#allocation2 + $0x40] sm:$0xff]  }
  0x17   :  { %v471_v27 = vld [vmem:[#allocation2 + $0x8] sm:$0xff]   ;;  %v474_v30 = vld [vmem:[#allocation2 + $0xc0] sm:$0xff]  }
  0x18   :  { %409 = vmatpush3.bf16.xpose.msra.mxu0 %v451_v6  ;;  %v472_v28 = vld [vmem:[#allocation2 + $0x88] sm:$0xff]   ;;  %v475_v31 = vld [vmem:[#allocation2] sm:$0xff]  }
  0x19   :  { %427 = vmatpush3.bf16.xpose.msra.mxu1 %v452_v7  ;;  %410 = vmatprep.subr.bf16.mxu0 %v453_v8  ;;  %v476_v32 = vld [vmem:[#allocation2 + $0x80] sm:$0xff]  }
  0x1a   :  { %428 = vmatprep.subr.bf16.mxu1 %v454_v9 }
  0x20   :  { %411 = vmatpush3.bf16.xpose.msra.mxu0 %v455_v10 }
  0x21   :  { %429 = vmatpush3.bf16.xpose.msra.mxu1 %v456_v11  ;;  %412 = vmatprep.subr.bf16.mxu0 %v457_v12 }
  0x22   :  { %430 = vmatprep.subr.bf16.mxu1 %v458_v13 }
  0x28   :  { %413 = vmatpush3.bf16.xpose.msra.mxu0 %v459_v14 }
  0x29   :  { %431 = vmatpush3.bf16.xpose.msra.mxu1 %v460_v15  ;;  %414 = vmatprep.subr.bf16.mxu0 %v461_v16 }
  0x2a   :  { %432 = vmatprep.subr.bf16.mxu1 %v462_v17 }
  0x30   :  { %415 = vmatpush3.bf16.xpose.msra.mxu0 %v463_v18 }
  0x31   :  { %433 = vmatpush3.bf16.xpose.msra.mxu1 %v464_v20  ;;  %416 = vmatprep.subr.bf16.mxu0 %v465_v21 }
  0x32   :  { %434 = vmatprep.subr.bf16.mxu1 %v466_v22 }
  0x38   :  { %417 = vmatpush3.bf16.xpose.msra.mxu0 %v467_v23 }
  0x39   :  { %435 = vmatpush3.bf16.xpose.msra.mxu1 %v468_v24  ;;  %418 = vmatprep.subr.bf16.mxu0 %v469_v25 }
  0x3a   :  { %436 = vmatprep.subr.bf16.mxu1 %v470_v26 }
  0x40   :  { %419 = vmatpush3.bf16.xpose.msra.mxu0 %v471_v27 }
  0x41   :  { %437 = vmatpush3.bf16.xpose.msra.mxu1 %v472_v28  ;;  %420 = vmatprep.subr.bf16.mxu0 %v473_v29 }
  0x42   :  { %438 = vmatprep.subr.bf16.mxu1 %v474_v30 }
  0x48   :  { %421 = vmatpush3.bf16.xpose.msra.mxu0 %v475_v31 }
  0x49   :  { %439 = vmatpush3.bf16.xpose.msra.mxu1 %v476_v32 }
  0x4f   :  { %423 = vmatmul.mubr.bf16.vlgmr.msra.gmra.mxu0 %v26_v19 }
  0x50   :  { %441 = vmatmul.mubr.bf16.vlgmr.msra.gmra.mxu1 %v26_v19 }
 0x10f   :  { %v317_v33 = vpop.f32.mrf.mxu0 }
 0x110   :  { %365 = vst [vmem:[%s537_s2] sm:$0xff] %v317_v33  ;;  %v358_v34 = vpop.f32.mrf.mxu1 }
 0x111   :  { %367 = vst [vmem:[%s537_s2 + $0x10] sm:$0xff] %v358_v34  ;;  %v319_v35 = vpop.f32.mrf.mxu0 }
 0x112   :  { %366 = vst [vmem:[%s537_s2 + $0x8] sm:$0xff] %v319_v35  ;;  %v360_v36 = vpop.f32.mrf.mxu1 }
 0x113   :  { %368 = vst [vmem:[%s537_s2 + $0x18] sm:$0xff] %v360_v36  ;;  %v321_v37 = vpop.f32.mrf.mxu0 }
 0x114   :  { %v362_v38 = vpop.f32.mrf.mxu1 }
 0x115   :  { %v322_v39 = vpop.f32.mrf.mxu0 }
 0x116   :  { %v363_v40 = vpop.f32.mrf.mxu1 }
 0x117   :  { %373 = vsyncpa [#allocation3], 1 }

</bundles_post_ra>
